<compile_context>
chip_gen: v7x
topology: tpu7x:2x2x1
jax: 0.10.0
libtpu: 0.0.40
codegen_flags: <defaults>
</compile_context>

<pallas_src>
import math

import jax
import jax.numpy as jnp
from jax import lax
from jax.experimental import pallas as pl
from jax.experimental.pallas import tpu as pltpu


# ---------------------------------------------------------------------------
# tiling helpers
# ---------------------------------------------------------------------------
def _pad_last_to(x, multiple=128):
    d = x.shape[-1]
    pad = (-d) % multiple
    if pad:
        x = jnp.pad(x, [(0, 0)] * (x.ndim - 1) + [(0, pad)])
    return x


def _choose_batch_block(B):
    # Keep the parallel grid extent >= 2 when possible (v7x has 2 TensorCores),
    # but batch several elements per step to amortize per-step overhead.
    cap = max(1, min(8, B // 2)) if B >= 2 else 1
    for bb in range(cap, 0, -1):
        if B % bb == 0:
            return bb
    return 1


def _choose_tile(n, target):
    """Largest multiple-of-8 divisor of n that is <= target, else full n."""
    if n <= target:
        return n
    for t in range(target, 7, -8):
        if n % t == 0:
            return t
    return n  # fallback: single full tile (second-to-last dim = full extent is legal)


# ---------------------------------------------------------------------------
# kernel bodies
# ---------------------------------------------------------------------------
def _make_single_step_kernel(masked, scale):
    """One K tile covers all keys: plain (non-online) softmax, no scratch."""

    def kernel(*refs):
        if masked:
            valid_ref, q_ref, k_ref, v_ref, o_ref = refs
        else:
            q_ref, k_ref, v_ref, o_ref = refs

        q = q_ref[...] * jnp.asarray(scale, q_ref.dtype)           # (Bb, Qt, Dp)
        s = jnp.einsum("bqd,bkd->bqk", q, k_ref[...],
                       preferred_element_type=jnp.float32)          # (Bb, Qt, K)
        if masked:
            col = lax.broadcasted_iota(jnp.int32, s.shape, 2)
            s = jnp.where(col < valid_ref[...], s, jnp.float32(-1e6))

        m = s.max(axis=-1, keepdims=True)
        p = jnp.exp(s - m)
        inv_l = pl.reciprocal(p.sum(axis=-1, keepdims=True), approx=True)  # EUP
        w = p * inv_l
        o_ref[...] = jnp.einsum("bqk,bkv->bqv", w.astype(v_ref.dtype), v_ref[...],
                                preferred_element_type=jnp.float32
                                ).astype(o_ref.dtype)

    return kernel


def _make_flash_kernel(masked, scale, k_tile):
    """Multi K-tile: flash-style online softmax with VMEM accumulators."""

    def kernel(*refs):
        if masked:
            valid_ref, q_ref, k_ref, v_ref, o_ref, m_sc, l_sc, acc_sc = refs
        else:
            q_ref, k_ref, v_ref, o_ref, m_sc, l_sc, acc_sc = refs

        kstep = pl.program_id(2)

        @pl.when(kstep == 0)
        def _init():
            m_sc[...] = jnp.full_like(m_sc, -jnp.inf)
            l_sc[...] = jnp.zeros_like(l_sc)
            acc_sc[...] = jnp.zeros_like(acc_sc)

        q = q_ref[...] * jnp.asarray(scale, q_ref.dtype)            # (Bb, Qt, Dp)
        s = jnp.einsum("bqd,bkd->bqk", q, k_ref[...],
                       preferred_element_type=jnp.float32)           # (Bb, Qt, Kt)
        if masked:
            col = kstep * k_tile + lax.broadcasted_iota(jnp.int32, s.shape, 2)
            s = jnp.where(col < valid_ref[...], s, jnp.float32(-1e6))

        m_prev = m_sc[...]
        m_new = jnp.maximum(m_prev, s.max(axis=-1, keepdims=True))
        alpha = jnp.exp(m_prev - m_new)
        p = jnp.exp(s - m_new)
        l_sc[...] = alpha * l_sc[...] + p.sum(axis=-1, keepdims=True)
        acc_sc[...] = alpha * acc_sc[...] + jnp.einsum(
            "bqk,bkv->bqv", p.astype(v_ref.dtype), v_ref[...],
            preferred_element_type=jnp.float32)
        m_sc[...] = m_new

        @pl.when(kstep == pl.num_programs(2) - 1)
        def _finalize():
            inv_l = pl.reciprocal(l_sc[...], approx=True)            # EUP, ~free
            o_ref[...] = (acc_sc[...] * inv_l).astype(o_ref.dtype)

    return kernel


# ---------------------------------------------------------------------------
# wrapper
# ---------------------------------------------------------------------------
def dot_product_attention(queries, keys, values, valid_lens=None,
                          *, q_tile_target=512, k_tile_target=512):
    """Pallas equivalent of DotProductAttention.forward (eval mode, no window_mask)."""
    B, Q, D = queries.shape
    _, K, _ = keys.shape
    Dv = values.shape[-1]
    out_dtype = queries.dtype
    scale = 1.0 / math.sqrt(D)  # scale uses the original (unpadded) d

    masked = valid_lens is not None
    if masked:
        # Normalize valid_lens to (B, Q, 1) int32 (1-D (B,) or 2-D (B, Q)).
        if valid_lens.ndim == 1:
            valid = jnp.broadcast_to(valid_lens.astype(jnp.int32)[:, None], (B, Q))
        else:
            valid = valid_lens.astype(jnp.int32)
        valid = valid.reshape(B, Q, 1)

    # Zero-pad feature dims to the 128-lane width (zeros don't change scores/outputs).
    qp = _pad_last_to(queries)
    kp = _pad_last_to(keys)
    vp = _pad_last_to(values)
    Dp = qp.shape[-1]
    Dvp = vp.shape[-1]

    Bb = _choose_batch_block(B)
    Qt = _choose_tile(Q, q_tile_target)
    Kt = _choose_tile(K, k_tile_target)
    n_b, n_q, n_k = B // Bb, Q // Qt, K // Kt

    if n_k == 1:
        # ----- single K tile: scratch-free one-pass softmax ------------------
        kernel = _make_single_step_kernel(masked, scale)
        grid = (n_b, n_q)
        in_specs = []
        args = []
        if masked:
            in_specs.append(pl.BlockSpec((Bb, Qt, 1), lambda b, q: (b, q, 0)))
            args.append(valid)
        in_specs += [
            pl.BlockSpec((Bb, Qt, Dp), lambda b, q: (b, q, 0)),    # queries
            pl.BlockSpec((Bb, K, Dp), lambda b, q: (b, 0, 0)),     # keys (full K)
            pl.BlockSpec((Bb, K, Dvp), lambda b, q: (b, 0, 0)),    # values (full K)
        ]
        args += [qp, kp, vp]
        grid_spec = pltpu.PrefetchScalarGridSpec(
            num_scalar_prefetch=0, grid=grid,
            in_specs=in_specs,
            out_specs=pl.BlockSpec((Bb, Qt, Dvp), lambda b, q: (b, q, 0)),
            scratch_shapes=[],
        )
        dim_sem = ("parallel", "parallel")
    else:
        # ----- flash-style online softmax over the K grid axis ---------------
        kernel = _make_flash_kernel(masked, scale, Kt)
        grid = (n_b, n_q, n_k)
        in_specs = []
        args = []
        if masked:
            in_specs.append(pl.BlockSpec((Bb, Qt, 1), lambda b, q, k: (b, q, 0)))
            args.append(valid)
        in_specs += [
            pl.BlockSpec((Bb, Qt, Dp), lambda b, q, k: (b, q, 0)),   # queries
            pl.BlockSpec((Bb, Kt, Dp), lambda b, q, k: (b, k, 0)),   # keys
            pl.BlockSpec((Bb, Kt, Dvp), lambda b, q, k: (b, k, 0)),  # values
        ]
        args += [qp, kp, vp]
        grid_spec = pltpu.PrefetchScalarGridSpec(
            num_scalar_prefetch=0, grid=grid,
            in_specs=in_specs,
            out_specs=pl.BlockSpec((Bb, Qt, Dvp), lambda b, q, k: (b, q, 0)),
            scratch_shapes=[
                pltpu.VMEM((Bb, Qt, 1), jnp.float32),    # running max m
                pltpu.VMEM((Bb, Qt, 1), jnp.float32),    # running denom l
                pltpu.VMEM((Bb, Qt, Dvp), jnp.float32),  # output accumulator
            ],
        )
        dim_sem = ("parallel", "parallel", "arbitrary")

    out = pl.pallas_call(
        kernel,
        out_shape=jax.ShapeDtypeStruct((B, Q, Dvp), out_dtype),
        grid_spec=grid_spec,
        compiler_params=pltpu.CompilerParams(dimension_semantics=dim_sem),
    )(*args)

    return out[..., :Dv]


# ---------------------------------------------------------------------------
# pure-JAX reference (mirrors the PyTorch module's forward, eval mode)
# ---------------------------------------------------------------------------
def _reference(queries, keys, values, valid_lens):
    d = queries.shape[-1]
    scores = jnp.einsum("bqd,bkd->bqk", queries, keys) / math.sqrt(d)
    if valid_lens is not None:
        K = scores.shape[-1]
        if valid_lens.ndim == 1:
            vl = valid_lens[:, None, None]
        else:
            vl = valid_lens[:, :, None]
        mask = jnp.arange(K)[None, None, :] < vl
        scores = jnp.where(mask, scores, -1e6)
    w = jax.nn.softmax(scores, axis=-1)
    return jnp.einsum("bqk,bkv->bqv", w, values)


if __name__ == "__main__":
    key = jax.random.PRNGKey(0)
    B, Q, K, D, Dv = 2, 8, 8, 32, 32

    kq, kk_, kv = jax.random.split(key, 3)
    queries = jax.random.normal(kq, (B, Q, D), dtype=jnp.float32)
    keys = jax.random.normal(kk_, (B, K, D), dtype=jnp.float32)
    values = jax.random.normal(kv, (B, K, Dv), dtype=jnp.float32)
    valid_lens = jnp.array([3, 6], dtype=jnp.int32)

    # 1-D valid_lens path (single K-tile fast path)
    out = jax.block_until_ready(dot_product_attention(queries, keys, values, valid_lens))
    ref = _reference(queries, keys, values, valid_lens)
    assert out.shape == (B, Q, Dv)
    assert jnp.allclose(out, ref, atol=5e-3, rtol=5e-3), "mismatch (1-D valid_lens)"

    # per-query 2-D valid_lens path
    vl2 = jnp.tile(jnp.arange(1, Q + 1, dtype=jnp.int32)[None, :], (B, 1))
    out2 = jax.block_until_ready(dot_product_attention(queries, keys, values, vl2))
    ref2 = _reference(queries, keys, values, vl2)
    assert jnp.allclose(out2, ref2, atol=5e-3, rtol=5e-3), "mismatch (2-D valid_lens)"

    # no masking path (unmasked kernel variant)
    out3 = jax.block_until_ready(dot_product_attention(queries, keys, values, None))
    ref3 = _reference(queries, keys, values, None)
    assert jnp.allclose(out3, ref3, atol=5e-3, rtol=5e-3), "mismatch (no valid_lens)"

    # flash (multi K-tile) path: force K tiling on a slightly longer key axis
    K2 = 16
    keys2 = jax.random.normal(kk_, (B, K2, D), dtype=jnp.float32)
    values2 = jax.random.normal(kv, (B, K2, Dv), dtype=jnp.float32)
    vl3 = jnp.array([5, 13], dtype=jnp.int32)
    out4 = jax.block_until_ready(
        dot_product_attention(queries, keys2, values2, vl3, k_tile_target=8))
    ref4 = _reference(queries, keys2, values2, vl3)
    assert jnp.allclose(out4, ref4, atol=5e-3, rtol=5e-3), "mismatch (flash path)"

    print("KERNEL_OK")
</pallas_src>

<mosaic_0001>
module attributes {stable_mosaic.version = 11 : i64} {
  func.func @kernel(%arg0: i32, %arg1: i32, %arg2: memref<1x8x1xi32, #tpu.memory_space<vmem>>, %arg3: memref<1x8x128xf32, #tpu.memory_space<vmem>>, %arg4: memref<1x8x128xf32, #tpu.memory_space<vmem>>, %arg5: memref<1x8x128xf32, #tpu.memory_space<vmem>>, %arg6: memref<1x8x128xf32, #tpu.memory_space<vmem>>) attributes {dimension_semantics = [#tpu.dimension_semantics<parallel>, #tpu.dimension_semantics<parallel>], iteration_bounds = array<i64: 2, 1>, scalar_prefetch = 0 : i64, scratch_operands = 0 : i64, tpu.core_type = #tpu.core_type<tc>, window_params = [{transform_indices = @transform_0, window_bounds = array<i64: 1, 8, 1>}, {transform_indices = @transform_1, window_bounds = array<i64: 1, 8, 128>}, {transform_indices = @transform_2, window_bounds = array<i64: 1, 8, 128>}, {transform_indices = @transform_3, window_bounds = array<i64: 1, 8, 128>}, {transform_indices = @transform_4, window_bounds = array<i64: 1, 8, 128>}]} {
    %c0 = arith.constant 0 : index
    %c0_0 = arith.constant 0 : index
    %c0_1 = arith.constant 0 : index
    %0 = vector.load %arg3[%c0, %c0_0, %c0_1] : memref<1x8x128xf32, #tpu.memory_space<vmem>>, vector<1x8x128xf32>
    %cst = arith.constant 0.176776692 : f32
    %1 = vector.broadcast %cst : f32 to vector<1x8x128xf32>
    %2 = arith.mulf %0, %1 : vector<1x8x128xf32>
    %c0_2 = arith.constant 0 : index
    %c0_3 = arith.constant 0 : index
    %c0_4 = arith.constant 0 : index
    %3 = vector.load %arg4[%c0_2, %c0_3, %c0_4] : memref<1x8x128xf32, #tpu.memory_space<vmem>>, vector<1x8x128xf32>
    "tpu.trace_start"() <{level = 10 : i32, message = "bqd,bkd->bqk"}> : () -> ()
    %cst_5 = arith.constant dense<0.000000e+00> : vector<1x8x8xf32>
    %4 = tpu.matmul %2, %3, %cst_5 {dimension_numbers = #tpu.dot_dimension_numbers<[2], [2], [1], [1], [0, 0, 0, 1, 1, 1], [0], [0]>} : vector<1x8x128xf32>, vector<1x8x128xf32>, vector<1x8x8xf32> -> vector<1x8x8xf32>
    "tpu.trace_stop"() : () -> ()
    %5 = tpu.iota {dimensions = array<i32: 2>} : vector<1x8x8xi32>
    %c0_6 = arith.constant 0 : index
    %c0_7 = arith.constant 0 : index
    %c0_8 = arith.constant 0 : index
    %6 = vector.load %arg2[%c0_6, %c0_7, %c0_8] : memref<1x8x1xi32, #tpu.memory_space<vmem>>, vector<1x8x1xi32>
    %7 = vector.broadcast %6 : vector<1x8x1xi32> to vector<1x8x8xi32>
    %8 = arith.cmpi slt, %5, %7 : vector<1x8x8xi32>
    %cst_9 = arith.constant -1.000000e+06 : f32
    %9 = vector.broadcast %cst_9 : f32 to vector<1x8x8xf32>
    %10 = arith.select %8, %4, %9 : vector<1x8x8xi1>, vector<1x8x8xf32>
    %cst_10 = arith.constant dense<0xFF800000> : vector<1x8xf32>
    %11 = vector.multi_reduction <maximumf>, %10, %cst_10 [2] : vector<1x8x8xf32> to vector<1x8xf32>
    %12 = vector.shape_cast %11 : vector<1x8xf32> to vector<1x8x1xf32>
    %13 = vector.broadcast %12 : vector<1x8x1xf32> to vector<1x8x8xf32>
    %14 = arith.subf %10, %13 : vector<1x8x8xf32>
    %15 = math.exp %14 : vector<1x8x8xf32>
    %cst_11 = arith.constant dense<0.000000e+00> : vector<1x8xf32>
    %16 = vector.multi_reduction <add>, %15, %cst_11 [2] : vector<1x8x8xf32> to vector<1x8xf32>
    %17 = vector.shape_cast %16 : vector<1x8xf32> to vector<1x8x1xf32>
    %18 = tpu.reciprocal %17 {approx = true} : vector<1x8x1xf32> -> vector<1x8x1xf32>
    %19 = vector.broadcast %18 : vector<1x8x1xf32> to vector<1x8x8xf32>
    %20 = arith.mulf %15, %19 : vector<1x8x8xf32>
    %c0_12 = arith.constant 0 : index
    %c0_13 = arith.constant 0 : index
    %c0_14 = arith.constant 0 : index
    %21 = vector.load %arg5[%c0_12, %c0_13, %c0_14] : memref<1x8x128xf32, #tpu.memory_space<vmem>>, vector<1x8x128xf32>
    "tpu.trace_start"() <{level = 10 : i32, message = "bqk,bkv->bqv"}> : () -> ()
    %cst_15 = arith.constant dense<0.000000e+00> : vector<1x8x128xf32>
    %22 = tpu.matmul %20, %21, %cst_15 {dimension_numbers = #tpu.dot_dimension_numbers<[2], [1], [1], [2], [0, 0, 0, 1, 1, 2], [0], [0]>} : vector<1x8x8xf32>, vector<1x8x128xf32>, vector<1x8x128xf32> -> vector<1x8x128xf32>
    "tpu.trace_stop"() : () -> ()
    %c0_16 = arith.constant 0 : index
    %c0_17 = arith.constant 0 : index
    %c0_18 = arith.constant 0 : index
    %23 = vector.load %arg6[%c0_16, %c0_17, %c0_18] : memref<1x8x128xf32, #tpu.memory_space<vmem>>, vector<1x8x128xf32>
    tpu.vector_store %arg6[%c0_16, %c0_17, %c0_18], %22 {strides = array<i32>} : memref<1x8x128xf32, #tpu.memory_space<vmem>>, vector<1x8x128xf32>,
    return
  }
  func.func @transform_0(%arg0: i32, %arg1: i32) -> (i32, i32, i32) {
    %c0_i32 = arith.constant 0 : i32
    %c0_i32_0 = arith.constant 0 : i32
    return %arg0, %arg1, %c0_i32 : i32, i32, i32
  }
  func.func @transform_1(%arg0: i32, %arg1: i32) -> (i32, i32, i32) {
    %c0_i32 = arith.constant 0 : i32
    %c0_i32_0 = arith.constant 0 : i32
    return %arg0, %arg1, %c0_i32 : i32, i32, i32
  }
  func.func @transform_2(%arg0: i32, %arg1: i32) -> (i32, i32, i32) {
    %c0_i32 = arith.constant 0 : i32
    %c0_i32_0 = arith.constant 0 : i32
    %c0_i32_1 = arith.constant 0 : i32
    return %arg0, %c0_i32, %c0_i32_0 : i32, i32, i32
  }
  func.func @transform_3(%arg0: i32, %arg1: i32) -> (i32, i32, i32) {
    %c0_i32 = arith.constant 0 : i32
    %c0_i32_0 = arith.constant 0 : i32
    %c0_i32_1 = arith.constant 0 : i32
    return %arg0, %c0_i32, %c0_i32_0 : i32, i32, i32
  }
  func.func @transform_4(%arg0: i32, %arg1: i32) -> (i32, i32, i32) {
    %c0_i32 = arith.constant 0 : i32
    %c0_i32_0 = arith.constant 0 : i32
    return %arg0, %arg1, %c0_i32 : i32, i32, i32
  }
}

</mosaic_0001>

<bundles_post_ra>
// kernel: tpu_custom_call.1
= control target key start
LH: loop header
LB: loop body
LE: loop exit
PB: predicated region body
PF: predicated region fallthrough
CT: control target
= control target key end

     0   :  { %9 = vsyncpa [#allocation3], 0  ;;  %s1160_s0 = inlined_call_operand.vmem [shape: s32[2,8,1], index: 0, kind: input, shape index: {}]   ;;  %s1161_s1 = inlined_call_operand.vmem [shape: f32[2,8,128], index: 1, kind: input, shape index: {}]   ;;  %s1162_s2 = inlined_call_operand.hbm [shape: f32[2,8,128], index: 2, kind: input, shape index: {}]   ;;  %s1163_s3 = inlined_call_operand.hbm [shape: f32[2,8,128], index: 3, kind: input, shape index: {}]   ;;  %s1164_s4 = inlined_call_operand.hbm [shape: f32[2,8,128], index: 4, kind: output, shape index: {}]  }
   0x1   :  { %11 = vsyncpa [#allocation3 + $0x1], 0 }
   0x2   :  { %12 = vsyncpa [#allocation6], 0 }
   0x3   :  { %14 = vsyncpa [#allocation6 + $0x1], 0 }
   0x4   :  { %15 = vsyncpa [#allocation4], 0 }
   0x5   :  { %17 = vsyncpa [#allocation4 + $0x1], 0  ;;  %s922_s15 = smov 0   ;;  %s924_s16 = smov 0  }
   0x6   :  { %s926_s17 = smov 0   ;;  %s928_s18 = smov 0  }
   0x7   :  { %s930_s19 = smov 0   ;;  %s932_s20 = smov 0  }
   0x8 LB: > { %s635_s21 = sadd.s32 4294967295, %s889_s20   ;;  %s636_s22 = sadd.s32 4294967294, %s889_s20   ;;  %s889_s20 = sphi %s932_s20, %s23_s20   ;;  %s885_s19 = sphi %s930_s19, %s1184_s19   ;;  %s881_s18 = sphi %s928_s18, %s1183_s18   ;;  %s877_s17 = sphi %s926_s17, %s1182_s17   ;;  %s873_s16 = sphi %s924_s16, %s1181_s16   ;;  %s869_s15 = sphi %s922_s15, %s1180_s15  }
   0x9   : > { %s35_s23 = sadd.s32 1, %s885_s19  ;;  %s98_s24 = sadd.s32 1, %s877_s17 }
   0xa   : > { %p37_p0 = scmp.ge.s32.totalorder %s35_s23, 2  ;;  %p105_p1 = scmp.ne.s32.totalorder %s877_s17, %s873_s16 }
   0xb   : > { %p106_p2 = scmp.eq.s32.totalorder %s889_s20, 0  ;;  %p111_p3 = scmp.ne.s32.totalorder %s873_s16, %s869_s15 }
   0xc   : > { %s1186_s23 = smov (%p37_p0, %s35_s23), 0  ;;  %p112_p5 = scmp.eq.s32.totalorder %s635_s21, 0 }
   0xd   : > { %p963_p4 = por %p106_p2, %p105_p1  ;;  %s95_s26 = ssub.s32 %s885_s19, %s1186_s23 }
   0xe   : > { %p163_p6 = scmp.eq.s32.totalorder %s635_s21, 1  ;;  %p96_p7 = scmp.eq.s32.totalorder %s95_s26, 0 }
   0xf   : > { %p969_p8 = por %p112_p5, %p111_p3  ;;  %p169_p10 = scmp.eq.s32.totalorder %s636_s22, 1 }
  0x10   : > { %p973_p9 = por %p163_p6, %p105_p1  ;;  %p685_p13 = scmp.lt.s32.totalorder %s889_s20, 2 }
  0x11   : > { %s1168_s27 = scalar_select %p969_p8, 1, 0 }
  0x12   : > { %s1169_s28 = scalar_select %p973_p9, 1, 0 }
  0x13   : > { %s978_s29 = scalar_select %p96_p7, %s877_s17, %s98_s24  }
  0x14   : > { %p980_p11 = por %p169_p10, %p111_p3  ;;  %s987_s5 = sand.u32 1, %s877_s17  }
  0x15   : > { %s639_s6 = sshll.u32 %s987_s5, 3  ;;  %s640_s7 = sshll.u32 %s885_s19, 7 }
  0x16   : > { %s1170_s30 = scalar_select %p980_p11, 1, 0 }
  0x17   : > { %s996_s10 = scalar_lea.hbm %s1162_s2, %s640_s7  ;;  %s213_s11 = scalar_lea.vmem [#allocation2], %s639_s6 }
  0x18   : > { %s220_s12 = sshll.u32 %s213_s11, 4  ;;  %p1004_p0 = pnand %p685_p13, %p963_p4  ;;  %s1000_s12 = int_to_ptr.vmem [resolvable:$true] %s220_s12 }
  0x19   : > { %s210_s14 = scalar_lea.sflag [#allocation3], %s987_s5  ;;  %s743_s21 = scalar_lea.hbm %s996_s10, 128 }
  0x1a   : > { %p744_p3 = scmp.ne.s32.totalorder %s996_s10, %s743_s21  ;;  %p745_p5 = pneg %p1004_p0 }
  0x1b   : > { %s748_s25 = scalar_lea.hbm %s1162_s2, 256  ;;  %p749_p4 = scmp.lt.u32.totalorder %s996_s10, %s1162_s2 }
  0x1c   : > { %p746_p6 = pnand %p745_p5, %p744_p3  ;;  %p750_p10 = scmp.lt.u32.totalorder %s748_s25, %s743_s21 }
  0x1d   : > { %p752_p12 = scmp.lt.u32.totalorder %s743_s21, %s996_s10 }
  0x1e   : > { %p747_p7 = pneg %p746_p6  ;;  %p751_p13 = por %p750_p10, %p749_p4 }
  0x20   : > { %p753_p1 = por %p752_p12, %p751_p13 }
  0x22   : > { %p754_p2 = pnand %p753_p1, %p747_p7 }
  0x24   : > { %757 = shalt.err (!%p754_p2)
}
  0x25   : > { %s758_s9 = scalar_lea.vmem %s1000_s12, 128  ;;  %s891_s11 = smov [#allocation2]  }
  0x26   : > { %p759_p3 = scmp.ne.s32.totalorder %s1000_s12, %s758_s9  ;;  %s763_s22 = sshll.u32 %s891_s11, 4  ;;  %s764_s22 = int_to_ptr.vmem [resolvable:$false] %s763_s22 }
  0x27   : > { %s765_s24 = scalar_lea.vmem %s764_s22, 256  ;;  %p766_p9 = scmp.lt.s32.totalorder %s1000_s12, %s764_s22 }
  0x28   : > { %p761_p6 = pnand %p759_p3, %p745_p5  ;;  %p767_p4 = scmp.lt.s32.totalorder %s765_s24, %s758_s9 }
  0x2a   : > { %p762_p11 = pneg %p761_p6  ;;  %p768_p10 = por %p767_p4, %p766_p9 }
  0x2c   : > { %p769_p12 = pnand %p768_p10, %p762_p11 }
  0x2e   : > { %772 = shalt.err (!%p769_p12)
}
  0x2f   : > { %677 = dma.hbm_to_vmem [thread:$0]  (!%p1004_p0), %s996_s10, 128, %s1000_s12, %s210_s14  }
  0x30   : > { %p1172_p1 = scmp.lt.s32.totalorder %s889_s20, 3  ;;  %p1173_p2 = scmp.ge.s32.totalorder %s889_s20, 1 }
  0x31   : > { %s1049_s8 = scalar_lea.hbm %s1163_s3, %s640_s7  ;;  %s231_s9 = scalar_lea.vmem [#allocation5], %s639_s6 }
  0x32   : > { %p1040_p7 = pnand %p1173_p2, %p1172_p1  ;;  %s238_s11 = sshll.u32 %s231_s9, 4  ;;  %s239_s11 = int_to_ptr.vmem [resolvable:$true] %s238_s11 }
  0x33   : > { %s228_s10 = scalar_lea.sflag [#allocation6], %s987_s5  ;;  %s773_s12 = scalar_lea.hbm %s1049_s8, 128 }
  0x34   : > { %s1174_s21 = scalar_select %p1040_p7, 1, 0 }
  0x35   : > { %p774_p9 = scmp.ne.s32.totalorder %s1049_s8, %s773_s12  ;;  %s778_s7 = scalar_lea.hbm %s1163_s3, 256 }
  0x36   : > { %p779_p3 = scmp.lt.u32.totalorder %s1049_s8, %s1163_s3  ;;  %p780_p6 = scmp.lt.u32.totalorder %s778_s7, %s773_s12 }
  0x37   : > { %p776_p11 = pnand %p774_p9, %p745_p5  ;;  %p782_p10 = scmp.lt.u32.totalorder %s773_s12, %s1049_s8 }
  0x38   : > { %p781_p4 = por %p780_p6, %p779_p3 }
  0x39   : > { %p777_p13 = pneg %p776_p11 }
  0x3a   : > { %p783_p12 = por %p782_p10, %p781_p4 }
  0x3c   : > { %p784_p1 = pnand %p783_p12, %p777_p13 }
  0x3e   : > { %787 = shalt.err (!%p784_p1)
}
  0x3f   : > { %s788_s5 = scalar_lea.vmem %s239_s11, 128  ;;  %s892_s6 = smov [#allocation5]  }
  0x40   : > { %p789_p2 = scmp.ne.s32.totalorder %s239_s11, %s788_s5  ;;  %s793_s26 = sshll.u32 %s892_s6, 4  ;;  %s794_s26 = int_to_ptr.vmem [resolvable:$false] %s793_s26 }
  0x41   : > { %s795_s9 = scalar_lea.vmem %s794_s26, 256  ;;  %p796_p8 = scmp.lt.s32.totalorder %s239_s11, %s794_s26 }
  0x42   : > { %p791_p9 = pnand %p789_p2, %p745_p5  ;;  %p797_p7 = scmp.lt.s32.totalorder %s795_s9, %s788_s5 }
  0x44   : > { %p792_p11 = pneg %p791_p9  ;;  %p798_p3 = por %p797_p7, %p796_p8 }
  0x46   : > { %p799_p6 = pnand %p798_p3, %p792_p11 }
  0x48   : > { %802 = shalt.err (!%p799_p6)
}
  0x49   : > { %680 = dma.hbm_to_vmem [thread:$0]  (!%p1004_p0), %s1049_s8, 128, %s239_s11, %s228_s10  }
  0x4a   : > { %p1175_p13 = scmp.ne.s32.totalorder %s1174_s21, 0 }
  0x4b   : > { %s1076_s12 = sand.u32 (!%p1175_p13), 1, %s873_s16   ;;  %p1176_p8 = scmp.ne.s32.totalorder (!%p1175_p13), %s1168_s27, 0 }
  0x4c   : > { %247 = sbr.rel (%p1175_p13) target bundleno = 848 (0x350), region = 36  ;;  %s1079_s14 = sshll.u32 (!%p1175_p13), %s1076_s12, 3 }
  0x4d   : > { %s250_s22 = scalar_lea.sflag (!%p1175_p13), [#allocation3], %s1076_s12  ;;  %s253_s7 = scalar_lea.vmem (!%p1175_p13), [#allocation2], %s1079_s14 }
  0x53   : > { %856 = dma.done.wait (%p1176_p8), %s250_s22, 128  }
  0x54   : > { %858 = vsyncadd (%p1176_p8), %s250_s22, 4294967168  ;;  %s259_s13 = scalar_lea.sflag [#allocation6], %s1076_s12  ;;  %s262_s21 = scalar_lea.vmem [#allocation5], %s1079_s14 }
  0x55   : > { %860 = dma.done.wait (%p1176_p8), %s259_s13, 128  }
  0x56   : > { %862 = vsyncadd (%p1176_p8), %s259_s13, 4294967168  ;;  %p306_p0 = scmp.lt.s32.totalorder %s881_s18, 1  ;;  %v893_v0 = vmov 0.0   ;;  %vm894_vm0 = vmmov 0   ;;  %v895_v1 = vmov 0   ;;  %v322_v2 = vld [vmem:[%s253_s7] sm:$0xff]  ;;  %v393_v6 = vlaneseq }
  0x57   : > { %658 = vmatprep.subr.mxu0 %v893_v0  ;;  %660 = vmatprep.mubr.msk.f32.mxu0 %vm894_vm0, %v893_v0  ;;  %vm401_vm2 = vcmask 64512   ;;  %v413_v18 = vld [vmem:[%s262_s21] sm:$0xff]  ;;  %s305_s26 = scalar_lea.vmem [#allocation7], %s1079_s14  ;;  %s651_s22 = sshll.u32 %s881_s18, 7 }
  0x58   : > { %s307_s8 = scalar_select %p306_p0, %s881_s18, 1  ;;  %738 = vset.pattern.permute.xlu0 %v895_v1  ;;  %663 = vmatprep.subr.mxu1 %v893_v0  ;;  %v394_v7 = vand.u32 127, %v393_v6 }
  0x59   : > { %665 = vmatprep.mubr.msk.f32.mxu1 %vm894_vm0, %v893_v0  ;;  %659 = vmatpush3.xpose.msra.mxu0 %v322_v2  ;;  %s503_s9 = sshll.u32 %s305_s26, 4  ;;  %s1113_s21 = scalar_lea.hbm %s1164_s4, %s651_s22  ;;  %s1108_s9 = int_to_ptr.vmem [resolvable:$true] %s503_s9 }
  0x5a   : > { %s647_s11 = sshll.u32 %s307_s8, 3  ;;  %664 = vmatpush3.msra.mxu1 %v413_v18  ;;  %s489_s8 = scalar_lea.sflag [#allocation4], %s1076_s12 }
  0x5b   : > { %s319_s25 = scalar_lea.vmem %s1161_s1, %s647_s11  ;;  %s312_s6 = scalar_lea.vmem %s1160_s0, %s647_s11 }
  0x5c   : > { %v320_v3 = vld [vmem:[%s319_s25] sm:$0xff]  ;;  %s803_s11 = scalar_lea.vmem %s1108_s9, 128  ;;  %p1177_p7 = scmp.ne.s32.totalorder %s1169_s28, 0 }
  0x5d   : > { %v395_v4 = vld [vmem:[%s312_s6] sm:$0xff]  ;;  %v321_v5 = vmul.f32 0.17677669, %v320_v3  ;;  %p804_p5 = scmp.ne.s32.totalorder %s1108_s9, %s803_s11  ;;  %s896_s18 = smov [#allocation7]  }
  0x5e   : > { %397 = vperm.xlu0 %738, %v395_v4   ;;  %s807_s14 = sshll.u32 %s896_s18, 4  ;;  %s808_s14 = int_to_ptr.vmem [resolvable:$false] %s807_s14 }
  0x5f   : > { %661 = vmatmul.mubr.f32.vlgmr.msra.gmra.mrb[0].mxu0 %v321_v5  ;;  %p805_p4 = pnand %p804_p5, %p1177_p7  ;;  %s809_s10 = scalar_lea.vmem %s808_s14, 256 }
  0x60   : > { %p810_p12 = scmp.lt.s32.totalorder %s1108_s9, %s808_s14  ;;  %p811_p1 = scmp.lt.s32.totalorder %s809_s10, %s803_s11 }
  0x61   : > { %p806_p10 = pneg %p805_p4 }
  0x62   : > { %p812_p2 = por %p811_p1, %p810_p12 }
  0x64   : > { %p813_p9 = pnand %p812_p2, %p806_p10 }
  0xdd   : > { %v398_v8 = vpop.permute.xlu0 %397 }
  0xde   : > { %vm399_vm1 = vcmp.lt.s32.totalorder %v394_v7, %v398_v8 }
 0x132   : > { %v389_v9 = vpop.f32.mrb[0].mxu0 }
 0x133   : > { %v400_v10 = vsel %vm399_vm1, %v389_v9, -1000000.0  ;;  %v662_v11 = vpop.f32.mrb[1].mxu0 }
 0x134   : > { %v402_v12 = vsel %vm401_vm2, %v400_v10, -inf }
 0x135   : > { %403 = vmax.xlane.f32.xlu0 %v402_v12 }
 0x1c2   : > { %v404_v13 = vpop.xlane.xlu0 %403 }
 0x1c3   : > { %v405_v14 = vsub.f32 %v400_v10, %v404_v13 }
 0x1c5   : > { %v406_v15 = vmul.f32 1.442695, %v405_v14 }
 0x1c7   : > { %739 = vpow2.f32 %v406_v15 }
 0x1d1   : > { %v740_v16 = vpop.eup %739 }
 0x1d2   : > { %v408_v17 = vsel %vm401_vm2, %v740_v16, 0.0 }
 0x1d3   : > { %409 = vadd.xlane.f32.xlu1 %v408_v17 }
 0x260   : > { %v410_v19 = vpop.xlane.xlu1 %409 }
 0x261   : > { %741 = vrcp.f32 %v410_v19 }
 0x26b   : > { %v742_v20 = vpop.eup %741 }
 0x26c   : > { %v412_v21 = vmul.f32 %v742_v20, %v740_v16 }
 0x26e   : > { %666 = vmatmul.mubr.msk.f32.vlgmr.msra.gmra.mrb[0].mxu1 %vm401_vm2, %v412_v21 }
 0x341   : > { %v483_v22 = vpop.f32.mrb[0].mxu1 }
 0x342   : > { %487 = vst [vmem:[%s305_s26] sm:$0xff] %v483_v22  ;;  %v667_v23 = vpop.f32.mrb[1].mxu1 }
 0x343   : > { %816 = shalt.err (!%p813_p9)
}
 0x344   : > { %s817_s12 = scalar_lea.hbm %s1113_s21, 128  ;;  %s821_s5 = scalar_lea.hbm %s1164_s4, 256 }
 0x345   : > { %p818_p11 = scmp.ne.s32.totalorder %s1113_s21, %s817_s12  ;;  %p822_p13 = scmp.lt.u32.totalorder %s1113_s21, %s1164_s4 }
 0x346   : > { %p823_p8 = scmp.lt.u32.totalorder %s821_s5, %s817_s12  ;;  %p825_p5 = scmp.lt.u32.totalorder %s817_s12, %s1113_s21 }
 0x347   : > { %p819_p3 = pnand %p818_p11, %p1177_p7 }
 0x348   : > { %p824_p0 = por %p823_p8, %p822_p13 }
 0x349   : > { %p820_p6 = pneg %p819_p3 }
 0x34a   : > { %p826_p4 = por %p825_p5, %p824_p0 }
 0x34c   : > { %p827_p10 = pnand %p826_p4, %p820_p6 }
 0x34e   : > { %830 = shalt.err (!%p827_p10)
}
 0x34f   : > { %672 = dma.vmem_to_hbm [thread:$0]  (%p1177_p7), %s1108_s9, 128, %s1113_s21, %s489_s8  }
 0x350 PF: > { %s515_s26 = sand.u32 1, %s869_s15   ;;  %p1178_p12 = scmp.ne.s32.totalorder %s1170_s30, 0 }
 0x351   : > { %p1179_p1 = scmp.ge.s32.totalorder %s889_s20, 2  ;;  %s516_s22 = scalar_lea.sflag [#allocation4], %s515_s26 }
 0x353   : > { %p682_p2 = pnand %p1179_p1, %p1178_p12 }
 0x355   : > { %864 = dma.done.wait (!%p682_p2), %s516_s22, 128  }
 0x356   : > { %866 = vsyncadd (!%p682_p2), %s516_s22, 4294967168  ;;  %s23_s20 = sadd.s32 1, %s889_s20   ;;  %s1180_s15 = smov %s873_s16 }
 0x357   : > { %p20_p9 = scmp.ge.s32.totalorder %s23_s20, 4   ;;  %s1181_s16 = smov %s877_s17 }
 0x358   : > { %s1182_s17 = smov %s978_s29  ;;  %s1183_s18 = smov %s885_s19 }
 0x359   : > { %s1184_s19 = smov %s1186_s23  ;;  %22 = sbr.rel (!%p20_p9) target bundleno = 8 (0x8), region = 100 }
 0x360   :  { %521 = vsyncpa [#allocation3], 1 }
 0x361   :  { %523 = vsyncpa [#allocation3 + $0x1], 1 }
 0x362   :  { %524 = vsyncpa [#allocation6], 1 }
 0x363   :  { %526 = vsyncpa [#allocation6 + $0x1], 1 }
 0x364   :  { %527 = vsyncpa [#allocation4], 1 }
 0x365   :  { %529 = vsyncpa [#allocation4 + $0x1], 1 }

</bundles_post_ra>
